<compile_context>
chip_gen: v5e
topology: v5e:2x2
jax: 0.10.0
libtpu: 0.0.40
codegen_flags: <defaults>
</compile_context>

<pallas_src>
import jax
import jax.numpy as jnp
from jax.experimental import pallas as pl
from jax.experimental.pallas import tpu as pltpu


def classifier2_kernel(x_ref, pm_ref, wbt_ref, bb_ref, w1_ref, b1_ref,
                       w2_ref, b2_ref, out_ref):
    # x_ref:   (C, TB*HW)  bf16   TB images, spatial axis dense on lanes
    # pm_ref:  (TB, TB*HW) f32    per-image mean-pool matrix (1/HW selectors)
    # wbt_ref: (F, C)      bf16   backbone 1x1-conv weight, transposed
    # bb_ref:  (F, 1)      f32    backbone bias (column)
    # w1_ref:  (F, S)      bf16   subhead Linear weight   b1_ref: (1, S) f32
    # w2_ref:  (S, Kp)     bf16   head Linear weight      b2_ref: (1, Kp) f32
    # out_ref: (1, TB, Kp) f32

    # --- backbone stand-in: pointwise conv + ReLU, transposed & lane-dense ---
    feat = jnp.dot(wbt_ref[...], x_ref[...],
                   preferred_element_type=jnp.float32)            # [F, TB*HW]
    feat = jnp.maximum(feat + bb_ref[...], 0.0)                   # f32 elementwise

    # --- per-image global average pool as an MXU contraction ---
    pooled = jnp.dot(pm_ref[...], feat.T,
                     preferred_element_type=jnp.float32)          # [TB, F]

    # --- subhead: Linear(in_features -> sub_features) ---
    h = jnp.dot(pooled.astype(jnp.bfloat16), w1_ref[...],
                preferred_element_type=jnp.float32) + b1_ref[...]  # [TB, S]

    # --- head: Linear(sub_features -> class_num)  (metric falsy branch) ---
    logits = jnp.dot(h.astype(jnp.bfloat16), w2_ref[...],
                     preferred_element_type=jnp.float32) + b2_ref[...]  # [TB, Kp]

    out_ref[0] = logits.astype(out_ref.dtype)


def classifier2_forward(x_nchw, params, *, tile_b=None):
    """x_nchw: [B, C, H, W] float32 -> logits [B, class_num] float32."""
    wb, bb, w1, b1, w2, b2 = params
    B, C, H, W = x_nchw.shape
    HW = H * W
    F = wb.shape[1]
    S = w1.shape[1]
    K = w2.shape[1]
    Kp = ((K + 127) // 128) * 128          # lane-dense (padded) class axis

    if tile_b is None:
        if B >= 4:
            # >= 2 grid steps so both v7x TensorCores get images, while still
            # batching as many images per step as possible (M toward 128/256).
            tile_b = max(1, min(128, B // 2))
        else:
            tile_b = B                      # tiny batch: maximize matmul M
    num_tiles = pl.cdiv(B, tile_b)
    B_pad = num_tiles * tile_b
    # Lane-dense x blocks need the block's last dim to be a multiple of 128
    # (or to cover the whole array when there is a single grid step).
    assert num_tiles == 1 or (tile_b * HW) % 128 == 0

    if B_pad != B:
        x_nchw = jnp.pad(x_nchw, ((0, B_pad - B), (0, 0), (0, 0), (0, 0)))

    # NCHW -> [C, B*HW]: batch*spatial dense on the lane axis, C on sublanes.
    x_cf = jnp.transpose(x_nchw, (1, 0, 2, 3)).reshape(C, B_pad * HW)
    x_cf = x_cf.astype(jnp.bfloat16)

    # Grid-invariant per-image mean-pool matrix: pm[t, j] = 1/HW iff column j
    # belongs to image t of the tile.
    img_of_col = jnp.arange(tile_b * HW, dtype=jnp.int32) // HW
    pm = (img_of_col[None, :] == jnp.arange(tile_b, dtype=jnp.int32)[:, None])
    pm = pm.astype(jnp.float32) / float(HW)                       # [TB, TB*HW]

    wbt = wb.T.astype(jnp.bfloat16)                               # [F, C]
    bbc = bb.reshape(F, 1).astype(jnp.float32)                    # [F, 1]
    w1b = w1.astype(jnp.bfloat16)                                 # [F, S]
    b1r = b1.reshape(1, S).astype(jnp.float32)
    w2p = jnp.pad(w2, ((0, 0), (0, Kp - K))).astype(jnp.bfloat16)  # [S, Kp]
    b2p = jnp.pad(b2.reshape(1, K), ((0, 0), (0, Kp - K))).astype(jnp.float32)

    flops = 2 * B_pad * (HW * C * F + HW * F + F * S + S * Kp)
    bytes_accessed = (x_cf.size * 2 + pm.size * 4
                      + wbt.size * 2 + w1b.size * 2 + w2p.size * 2
                      + bbc.size * 4 + b1r.size * 4 + b2p.size * 4
                      + B_pad * Kp * 4)

    out = pl.pallas_call(
        classifier2_kernel,
        out_shape=jax.ShapeDtypeStruct((num_tiles, tile_b, Kp), jnp.float32),
        grid_spec=pltpu.PrefetchScalarGridSpec(
            num_scalar_prefetch=0,
            grid=(num_tiles,),
            in_specs=[
                pl.BlockSpec((C, tile_b * HW), lambda b: (0, b)),       # x
                pl.BlockSpec((tile_b, tile_b * HW), lambda b: (0, 0)),  # pool mat
                pl.BlockSpec((F, C), lambda b: (0, 0)),                 # wbt
                pl.BlockSpec((F, 1), lambda b: (0, 0)),                 # bb
                pl.BlockSpec((F, S), lambda b: (0, 0)),                 # w1
                pl.BlockSpec((1, S), lambda b: (0, 0)),                 # b1
                pl.BlockSpec((S, Kp), lambda b: (0, 0)),                # w2 (padded)
                pl.BlockSpec((1, Kp), lambda b: (0, 0)),                # b2 (padded)
            ],
            out_specs=pl.BlockSpec((1, tile_b, Kp), lambda b: (b, 0, 0)),
        ),
        compiler_params=pltpu.CompilerParams(
            dimension_semantics=("parallel",)),
        cost_estimate=pl.CostEstimate(
            flops=flops, transcendentals=0, bytes_accessed=bytes_accessed),
    )(x_cf, pm, wbt, bbc, w1b, b1r, w2p, b2p)

    return out.reshape(B_pad, Kp)[:B, :K]


def init_params(key, C, in_features, sub_features, class_num):
    k = jax.random.split(key, 6)
    wb = jax.random.normal(k[0], (C, in_features), jnp.float32) * 0.1
    bb = jax.random.normal(k[1], (1, in_features), jnp.float32) * 0.01
    w1 = jax.random.normal(k[2], (in_features, sub_features), jnp.float32) * 0.05
    b1 = jax.random.normal(k[3], (1, sub_features), jnp.float32) * 0.01
    w2 = jax.random.normal(k[4], (sub_features, class_num), jnp.float32) * 0.05
    b2 = jax.random.normal(k[5], (1, class_num), jnp.float32) * 0.01
    return (wb, bb, w1, b1, w2, b2)


if __name__ == "__main__":
    B, C, H, W = 2, 4, 16, 16          # small NCHW input
    in_features = 32                    # backbone.num_features (stand-in)
    sub_features = 512                  # as in the module
    class_num = 10

    key = jax.random.PRNGKey(0)
    kx, kp = jax.random.split(key)
    x = jax.random.normal(kx, (B, C, H, W), jnp.float32)
    params = init_params(kp, C, in_features, sub_features, class_num)

    out = classifier2_forward(x, params)
    out = jax.block_until_ready(out)
    assert out.shape == (B, class_num) and out.dtype == jnp.float32
    print("KERNEL_OK")
</pallas_src>

<mosaic_0001>
module attributes {stable_mosaic.version = 11 : i64} {
  func.func @classifier2_kernel(%arg0: i32, %arg1: memref<4x512xbf16, #tpu.memory_space<vmem>>, %arg2: memref<2x512xf32, #tpu.memory_space<vmem>>, %arg3: memref<32x4xbf16, #tpu.memory_space<vmem>>, %arg4: memref<32x1xf32, #tpu.memory_space<vmem>>, %arg5: memref<32x512xbf16, #tpu.memory_space<vmem>>, %arg6: memref<1x512xf32, #tpu.memory_space<vmem>>, %arg7: memref<512x128xbf16, #tpu.memory_space<vmem>>, %arg8: memref<1x128xf32, #tpu.memory_space<vmem>>, %arg9: memref<1x2x128xf32, #tpu.memory_space<vmem>>) attributes {dimension_semantics = [#tpu.dimension_semantics<parallel>], iteration_bounds = array<i64: 1>, scalar_prefetch = 0 : i64, scratch_operands = 0 : i64, tpu.core_type = #tpu.core_type<tc>, window_params = [{transform_indices = @transform_0, window_bounds = array<i64: 4, 512>}, {pipeline_mode = #tpu.pipeline_mode<synchronous>, transform_indices = @transform_1, window_bounds = array<i64: 2, 512>}, {pipeline_mode = #tpu.pipeline_mode<synchronous>, transform_indices = @transform_2, window_bounds = array<i64: 32, 4>}, {pipeline_mode = #tpu.pipeline_mode<synchronous>, transform_indices = @transform_3, window_bounds = array<i64: 32, 1>}, {pipeline_mode = #tpu.pipeline_mode<synchronous>, transform_indices = @transform_4, window_bounds = array<i64: 32, 512>}, {pipeline_mode = #tpu.pipeline_mode<synchronous>, transform_indices = @transform_5, window_bounds = array<i64: 1, 512>}, {pipeline_mode = #tpu.pipeline_mode<synchronous>, transform_indices = @transform_6, window_bounds = array<i64: 512, 128>}, {pipeline_mode = #tpu.pipeline_mode<synchronous>, transform_indices = @transform_7, window_bounds = array<i64: 1, 128>}, {transform_indices = @transform_8, window_bounds = array<i64: 1, 2, 128>}]} {
    %c0 = arith.constant 0 : index
    %c0_0 = arith.constant 0 : index
    %0 = vector.load %arg3[%c0, %c0_0] : memref<32x4xbf16, #tpu.memory_space<vmem>>, vector<32x4xbf16>
    %c0_1 = arith.constant 0 : index
    %c0_2 = arith.constant 0 : index
    %1 = vector.load %arg1[%c0_1, %c0_2] : memref<4x512xbf16, #tpu.memory_space<vmem>>, vector<4x512xbf16>
    %cst = arith.constant dense<0.000000e+00> : vector<32x512xf32>
    %2 = tpu.matmul %0, %1, %cst {dimension_numbers = #tpu.dot_dimension_numbers<[1], [0], [0], [1], [0, 0, 1, 1], [], []>} : vector<32x4xbf16>, vector<4x512xbf16>, vector<32x512xf32> -> vector<32x512xf32>
    %c0_3 = arith.constant 0 : index
    %c0_4 = arith.constant 0 : index
    %3 = vector.load %arg4[%c0_3, %c0_4] : memref<32x1xf32, #tpu.memory_space<vmem>>, vector<32x1xf32>
    %4 = vector.broadcast %3 : vector<32x1xf32> to vector<32x512xf32>
    %5 = arith.addf %2, %4 : vector<32x512xf32>
    %cst_5 = arith.constant 0.000000e+00 : f32
    %6 = vector.broadcast %cst_5 : f32 to vector<32x512xf32>
    %7 = arith.maximumf %5, %6 : vector<32x512xf32>
    %c0_6 = arith.constant 0 : index
    %c0_7 = arith.constant 0 : index
    %8 = vector.load %arg2[%c0_6, %c0_7] : memref<2x512xf32, #tpu.memory_space<vmem>>, vector<2x512xf32>
    %9 = tpu.transpose %7, [1, 0] : vector<32x512xf32> -> vector<512x32xf32>
    %cst_8 = arith.constant dense<0.000000e+00> : vector<2x32xf32>
    %10 = tpu.matmul %8, %9, %cst_8 {dimension_numbers = #tpu.dot_dimension_numbers<[1], [0], [0], [1], [0, 0, 1, 1], [], []>} : vector<2x512xf32>, vector<512x32xf32>, vector<2x32xf32> -> vector<2x32xf32>
    %11 = arith.truncf %10 : vector<2x32xf32> to vector<2x32xbf16>
    %c0_9 = arith.constant 0 : index
    %c0_10 = arith.constant 0 : index
    %12 = vector.load %arg5[%c0_9, %c0_10] : memref<32x512xbf16, #tpu.memory_space<vmem>>, vector<32x512xbf16>
    %cst_11 = arith.constant dense<0.000000e+00> : vector<2x512xf32>
    %13 = tpu.matmul %11, %12, %cst_11 {dimension_numbers = #tpu.dot_dimension_numbers<[1], [0], [0], [1], [0, 0, 1, 1], [], []>} : vector<2x32xbf16>, vector<32x512xbf16>, vector<2x512xf32> -> vector<2x512xf32>
    %c0_12 = arith.constant 0 : index
    %c0_13 = arith.constant 0 : index
    %14 = vector.load %arg6[%c0_12, %c0_13] : memref<1x512xf32, #tpu.memory_space<vmem>>, vector<1x512xf32>
    %15 = vector.broadcast %14 : vector<1x512xf32> to vector<2x512xf32>
    %16 = arith.addf %13, %15 : vector<2x512xf32>
    %17 = arith.truncf %16 : vector<2x512xf32> to vector<2x512xbf16>
    %c0_14 = arith.constant 0 : index
    %c0_15 = arith.constant 0 : index
    %18 = vector.load %arg7[%c0_14, %c0_15] : memref<512x128xbf16, #tpu.memory_space<vmem>>, vector<512x128xbf16>
    %cst_16 = arith.constant dense<0.000000e+00> : vector<2x128xf32>
    %19 = tpu.matmul %17, %18, %cst_16 {dimension_numbers = #tpu.dot_dimension_numbers<[1], [0], [0], [1], [0, 0, 1, 1], [], []>} : vector<2x512xbf16>, vector<512x128xbf16>, vector<2x128xf32> -> vector<2x128xf32>
    %c0_17 = arith.constant 0 : index
    %c0_18 = arith.constant 0 : index
    %20 = vector.load %arg8[%c0_17, %c0_18] : memref<1x128xf32, #tpu.memory_space<vmem>>, vector<1x128xf32>
    %21 = vector.broadcast %20 : vector<1x128xf32> to vector<2x128xf32>
    %22 = arith.addf %19, %21 : vector<2x128xf32>
    %c0_19 = arith.constant 0 : index
    %c0_20 = arith.constant 0 : index
    %c0_21 = arith.constant 0 : index
    %23 = vector.load %arg9[%c0_19, %c0_20, %c0_21] : memref<1x2x128xf32, #tpu.memory_space<vmem>>, vector<1x2x128xf32>
    %24 = vector.shape_cast %23 : vector<1x2x128xf32> to vector<2x128xf32>
    %25 = vector.shape_cast %22 : vector<2x128xf32> to vector<1x2x128xf32>
    tpu.vector_store %arg9[%c0_19, %c0_20, %c0_21], %25 {strides = array<i32>} : memref<1x2x128xf32, #tpu.memory_space<vmem>>, vector<1x2x128xf32>,
    return
  }
  func.func @transform_0(%arg0: i32) -> (i32, i32) {
    %c0_i32 = arith.constant 0 : i32
    %c0_i32_0 = arith.constant 0 : i32
    return %c0_i32, %arg0 : i32, i32
  }
  func.func @transform_1(%arg0: i32) -> (i32, i32) {
    %c0_i32 = arith.constant 0 : i32
    %c0_i32_0 = arith.constant 0 : i32
    %c0_i32_1 = arith.constant 0 : i32
    return %c0_i32, %c0_i32_0 : i32, i32
  }
  func.func @transform_2(%arg0: i32) -> (i32, i32) {
    %c0_i32 = arith.constant 0 : i32
    %c0_i32_0 = arith.constant 0 : i32
    %c0_i32_1 = arith.constant 0 : i32
    return %c0_i32, %c0_i32_0 : i32, i32
  }
  func.func @transform_3(%arg0: i32) -> (i32, i32) {
    %c0_i32 = arith.constant 0 : i32
    %c0_i32_0 = arith.constant 0 : i32
    %c0_i32_1 = arith.constant 0 : i32
    return %c0_i32, %c0_i32_0 : i32, i32
  }
  func.func @transform_4(%arg0: i32) -> (i32, i32) {
    %c0_i32 = arith.constant 0 : i32
    %c0_i32_0 = arith.constant 0 : i32
    %c0_i32_1 = arith.constant 0 : i32
    return %c0_i32, %c0_i32_0 : i32, i32
  }
  func.func @transform_5(%arg0: i32) -> (i32, i32) {
    %c0_i32 = arith.constant 0 : i32
    %c0_i32_0 = arith.constant 0 : i32
    %c0_i32_1 = arith.constant 0 : i32
    return %c0_i32, %c0_i32_0 : i32, i32
  }
  func.func @transform_6(%arg0: i32) -> (i32, i32) {
    %c0_i32 = arith.constant 0 : i32
    %c0_i32_0 = arith.constant 0 : i32
    %c0_i32_1 = arith.constant 0 : i32
    return %c0_i32, %c0_i32_0 : i32, i32
  }
  func.func @transform_7(%arg0: i32) -> (i32, i32) {
    %c0_i32 = arith.constant 0 : i32
    %c0_i32_0 = arith.constant 0 : i32
    %c0_i32_1 = arith.constant 0 : i32
    return %c0_i32, %c0_i32_0 : i32, i32
  }
  func.func @transform_8(%arg0: i32) -> (i32, i32, i32) {
    %c0_i32 = arith.constant 0 : i32
    %c0_i32_0 = arith.constant 0 : i32
    %c0_i32_1 = arith.constant 0 : i32
    return %arg0, %c0_i32, %c0_i32_0 : i32, i32, i32
  }
}

</mosaic_0001>

<bundles_post_ra>
// kernel: tpu_custom_call.1
= control target key start
LH: loop header
LB: loop body
LE: loop exit
PB: predicated region body
PF: predicated region fallthrough
CT: control target
= control target key end

     0   :  { %13 = vsyncpa [#allocation3], 0  ;;  %s1164_s0 = inlined_call_operand.vmem [shape: bf16[4,512], index: 0, kind: input, shape index: {}]   ;;  %s1165_s1 = inlined_call_operand.vmem [shape: f32[2,512], index: 1, kind: input, shape index: {}]   ;;  %s1166_s2 = inlined_call_operand.vmem [shape: bf16[32,4], index: 2, kind: input, shape index: {}]   ;;  %s1167_s3 = inlined_call_operand.vmem [shape: f32[32,1], index: 3, kind: input, shape index: {}]   ;;  %s1168_s4 = inlined_call_operand.hbm [shape: bf16[32,512], index: 4, kind: input, shape index: {}]   ;;  %s1169_s5 = inlined_call_operand.vmem [shape: f32[1,512], index: 5, kind: input, shape index: {}]   ;;  %s1170_s6 = inlined_call_operand.hbm [shape: bf16[512,128], index: 6, kind: input, shape index: {}]   ;;  %s1171_s7 = inlined_call_operand.vmem [shape: f32[1,128], index: 7, kind: input, shape index: {}]   ;;  %s1172_s8 = inlined_call_operand.hbm [shape: f32[1,2,128], index: 8, kind: output, shape index: {}]  }
   0x1   :  { %14 = vsyncpa [#allocation6], 0 }
   0x2   :  { %15 = vsyncpa [#allocation4], 0  ;;  %s28_s29 = sshll.u32 %s1168_s4, 4  ;;  %s1068_s30 = smov [#allocation2]   ;;  %s29_s29 = int_to_ptr.hbm [resolvable:$true] %s28_s29 }
   0x3   :  { %s30_s9 = sshll.u32 %s1068_s30, 4  ;;  %s43_s12 = sshll.u32 %s1170_s6, 4  ;;  %s31_s9 = int_to_ptr.vmem [resolvable:$true] %s30_s9  ;;  %s44_s12 = int_to_ptr.hbm [resolvable:$true] %s43_s12 }
   0x4   :  { %s1069_s13 = smov 256   ;;  %s1070_s14 = smov 16  }
   0x5   :  { %36 = dma.hbm_to_vmem [thread:$0]  %s29_s29, 1024, %s31_s9, [#allocation3], %s1069_s13, %s1069_s13, %s1070_s14  }
   0x6   :  { %s1071_s15 = smov [#allocation5]   ;;  %s1072_s17 = smov 64  }
   0x7   :  { %s45_s16 = sshll.u32 %s1071_s15, 4  ;;  %s1073_s18 = smov 4   ;;  %s46_s16 = int_to_ptr.vmem [resolvable:$true] %s45_s16 }
   0x8   :  { %51 = dma.hbm_to_vmem [thread:$0]  %s44_s12, 4096, %s46_s16, [#allocation6], %s1072_s17, %s1072_s17, %s1073_s18  }
   0x9   :  { %1062 = dma.done.wait [#allocation3], 1024  }
   0xa   :  { %1063 = vsyncadd [#allocation3], 4294966272 }
   0xb   :  { %1064 = dma.done.wait [#allocation6], 4096  }
   0xc   :  { %1065 = vsyncadd [#allocation6], 4294963200  ;;  %v1074_v0 = vmov 0   ;;  %v67_v1 = vld [vmem:[%s1164_s0] sm:$0xff]  ;;  %v69_v2 = vld [vmem:[%s1167_s3 + $0x8] sm:$0xff]  ;;  %vm115_vm0 = vcmask 1041408  }
   0xd   :  { %988 = vset.pattern.permute.xlu1 %v1074_v0  ;;  %987 = vset.pattern.permute.xlu0 %v1074_v0  ;;  %103 = vst [vmem:[#allocation1] ss:$4 sm:$0xff] %v67_v1  ;;  %v71_v3 = vld [vmem:[%s1167_s3 + $0x18] sm:$0xff]  ;;  %v216_v4 = vld [vmem:[%s1165_s1] sm:$0xff]  ;;  %v70_v12 = vld [vmem:[%s1167_s3 + $0x10] sm:$0xff]  ;;  %vm108_vm1 = vcmask 31744  }
   0xe   :  { %79 = vperm.xlu1 %988, %v69_v2   ;;  %89 = vperm.xlu0 %987, %v71_v3   ;;  %v937_v5 = vld [vmem:[%s1166_s2] sm:$0xff]  ;;  %v938_v16 = vld [vmem:[%s1166_s2 + $0x8] sm:$0xff]  ;;  %vm366_vm2 = vcmask 261120   ;;  %s1075_s10 = smov [#allocation7]   ;;  %s746_s14 = sshll.u32 %s1172_s8, 4  ;;  %s747_s14 = int_to_ptr.hbm [resolvable:$true] %s746_s14 }
   0xf   :  { %v68_v6 = vld [vmem:[%s1167_s3] sm:$0xff]  ;;  %s744_s11 = sshll.u32 %s1075_s10, 4  ;;  %s745_s11 = int_to_ptr.vmem [resolvable:$true] %s744_s11 }
  0x14   :  { %v104_v7 = vld.sshfl [vmem:[#allocation1] sm:$0xff pattern:$0x73625140]  ;;  %v105_v8 = vld.sshfl [vmem:[#allocation1 + $0x8] sm:$0xff pattern:$0x73625140] }
  0x15   :  { %v116_v9 = vsel %vm115_vm0, %v104_v7, 0  ;;  %v118_v10 = vsel %vm115_vm0, %v105_v8, 0  ;;  %v106_v11 = vld.sshfl [vmem:[#allocation1 + $0x10] sm:$0xff pattern:$0x73625140] }
  0x16   :  { %131 = vmatpush.bf16.msra.mxu0 %v116_v9  ;;  %150 = vmatpush.bf16.msra.mxu1 %v118_v10  ;;  %v120_v13 = vsel %vm115_vm0, %v106_v11, 0  ;;  %v107_v14 = vld.sshfl [vmem:[#allocation1 + $0x18] sm:$0xff pattern:$0x73625140]  ;;  %v799_v9 = vld [vmem:[#allocation2 + $0x28] sm:$0xf] }
  0x17   :  { %169 = vmatpush.bf16.msra.mxu2 %v120_v13  ;;  %v122_v15 = vsel %vm115_vm0, %v107_v14, 0  ;;  %218 = vst [vmem:[#allocation1] ss:$4 sm:$0xff] %v216_v4  ;;  %74 = vperm.xlu1 %988, %v68_v6   ;;  %v946_v10 = vld [vmem:[#allocation2 + $0x34] sm:$0xf0] }
  0x18   :  { %188 = vmatpush.bf16.msra.mxu3 %v122_v15  ;;  %84 = vperm.xlu0 %987, %v70_v12   ;;  %v791_v11 = vld [vmem:[#allocation2 + $0x20] sm:$0xf]  ;;  %v800_v12 = vor.u32 %v946_v10, %v799_v9  ;;  %v945_v13 = vld [vmem:[#allocation2 + $0x2c] sm:$0xf0]  ;;  %v943_v14 = vld [vmem:[#allocation2 + $0x24] sm:$0xf] }
  0x19   :  { %765 = vmatmul.msk.bf16.vlgmr.msra.gmra.mxu0 %vm108_vm1, %v937_v5  ;;  %767 = vmatmul.msk.bf16.vlgmr.msra.gmra.mxu1 %vm108_vm1, %v937_v5  ;;  %v793_v15 = vld [vmem:[#allocation2 + $0x30] sm:$0xf0]  ;;  %v316_v9 = vld [vmem:[%s1169_s5] sm:$0xf] }
  0x1a   :  { %769 = vmatmul.msk.bf16.vlgmr.msra.gmra.mxu2 %vm108_vm1, %v937_v5  ;;  %v318_v10 = vperm.slane %v316_v9, 0 }
  0x1b   :  { %771 = vmatmul.msk.bf16.vlgmr.msra.gmra.mxu3 %vm108_vm1, %v937_v5 }
  0x1e   :  { %v219_v63 = vld.sshfl [vmem:[#allocation1] sm:$0xff pattern:$0x73625140]  ;;  %v220_v2 = vld.sshfl [vmem:[#allocation1 + $0x8] sm:$0xff pattern:$0x73625140] }
  0x1f   :  { %v221_v7 = vld.sshfl [vmem:[#allocation1 + $0x10] sm:$0xff pattern:$0x73625140]  ;;  %v222_v8 = vld.sshfl [vmem:[#allocation1 + $0x18] sm:$0xff pattern:$0x73625140] }
  0x29   :  { %766 = vmatmul.msk.bf16.gmra.mxu0 %vm108_vm1, %v938_v16  ;;  %768 = vmatmul.msk.bf16.gmra.mxu1 %vm108_vm1, %v938_v16 }
  0x2a   :  { %770 = vmatmul.msk.bf16.gmra.mxu2 %vm108_vm1, %v938_v16 }
  0x2b   :  { %772 = vmatmul.msk.bf16.gmra.mxu3 %vm108_vm1, %v938_v16  ;;  %v792_v16 = vor.u32 %v945_v13, %v791_v11  ;;  %v319_v11 = vperm.slane %v316_v9, 1 }
  0x80   :  { %v90_v23 = vpop.permute.xlu0 %89  ;;  %v80_v28 = vpop.permute.xlu1 %79 }
  0x89   :  { %v75_v48 = vpop.permute.xlu1 %74 }
  0x8a   :  { %v85_v34 = vpop.permute.xlu0 %84 }
  0x96   :  { %v133_v17 = vpop.f32.mrf.mxu0  ;;  %v152_v18 = vpop.f32.mrf.mxu1 }
  0x97   :  { %v134_v54 = vadd.f32 %v133_v17, %v75_v48  ;;  %v153_v56 = vadd.f32 %v152_v18, %v75_v48  ;;  %v796_v17 = vor.u32 %v943_v14, %v793_v15  ;;  %v944_v18 = vld [vmem:[#allocation2 + $0x2c] sm:$0xf] }
  0x99   :  { %v200_v61 = vmax.f32 %v134_v54, 0.0  ;;  %v201_v62 = vmax.f32 %v153_v56, 0.0  ;;  %v957_v56 = vld [vmem:[#allocation5 + $0x50] sm:$0xff] }
  0x9d   :  { %v171_v19 = vpop.f32.mrf.mxu2 }
  0x9e   :  { %v190_v20 = vpop.f32.mrf.mxu3  ;;  %v135_v21 = vpop.f32.mrf.mxu0  ;;  %v172_v0 = vadd.f32 %v171_v19, %v75_v48  ;;  %v801_v19 = vld [vmem:[#allocation2 + $0x38] sm:$0xf0] }
  0x9f   :  { %v154_v22 = vpop.f32.mrf.mxu1  ;;  %v136_v40 = vadd.f32 %v135_v21, %v80_v28  ;;  %v191_v3 = vadd.f32 %v190_v20, %v75_v48  ;;  %v804_v20 = vor.u32 %v944_v18, %v801_v19  ;;  %v783_v21 = vld [vmem:[#allocation2 + $0x8] sm:$0xf]  ;;  %v975_v48 = vld [vmem:[#allocation5 + $0xe0] sm:$0xff]  ;;  %v321_v19 = vperm.slane %v316_v9, 3 }
  0xa0   :  { %v155_v43 = vadd.f32 %v154_v22, %v80_v28  ;;  %v202_v5 = vmax.f32 %v172_v0, 0.0  ;;  %v942_v22 = vld [vmem:[#allocation2 + $0x14] sm:$0xf0] }
  0xa1   :  { %v204_v51 = vmax.f32 %v136_v40, 0.0  ;;  %v203_v6 = vmax.f32 %v191_v3, 0.0  ;;  %v977_v40 = vld [vmem:[#allocation5 + $0xf0] sm:$0xff]  ;;  %v947_v3 = vld [vmem:[#allocation5] sm:$0xff] }
  0xa2   :  { %v205_v55 = vmax.f32 %v155_v43, 0.0  ;;  %v968_v43 = vld [vmem:[#allocation5 + $0xa8] sm:$0xff] }
  0xa5   :  { %v173_v24 = vpop.f32.mrf.mxu2 }
  0xa6   :  { %v192_v25 = vpop.f32.mrf.mxu3  ;;  %v138_v26 = vpop.f32.mrf.mxu0  ;;  %v174_v57 = vadd.f32 %v173_v24, %v80_v28  ;;  %v784_v24 = vor.u32 %v942_v22, %v783_v21 }
  0xa7   :  { %v157_v27 = vpop.f32.mrf.mxu1  ;;  %v139_v37 = vadd.f32 %v138_v26, %v85_v34  ;;  %v193_v59 = vadd.f32 %v192_v25, %v80_v28  ;;  %v941_v25 = vld [vmem:[#allocation2 + $0xc] sm:$0xf0]  ;;  %v939_v26 = vld [vmem:[#allocation2 + $0x4] sm:$0xf] }
  0xa8   :  { %v158_v39 = vadd.f32 %v157_v27, %v85_v34  ;;  %v206_v1 = vmax.f32 %v174_v57, 0.0  ;;  %v777_v27 = vld [vmem:[#allocation2 + $0x10] sm:$0xf0] }
  0xa9   :  { %v208_v42 = vmax.f32 %v139_v37, 0.0  ;;  %v207_v4 = vmax.f32 %v193_v59, 0.0  ;;  %v953_v37 = vld [vmem:[#allocation5 + $0x30] sm:$0xff]  ;;  %v948_v59 = vld [vmem:[#allocation5 + $0x8] sm:$0xff] }
  0xaa   :  { %v209_v46 = vmax.f32 %v158_v39, 0.0  ;;  %v969_v39 = vld [vmem:[#allocation5 + $0xb0] sm:$0xff] }
  0xab   :  { %v965_v57 = vld [vmem:[#allocation5 + $0x90] sm:$0xff] }
  0xad   :  { %v176_v29 = vpop.f32.mrf.mxu2 }
  0xae   :  { %v195_v30 = vpop.f32.mrf.mxu3  ;;  %v140_v31 = vpop.f32.mrf.mxu0  ;;  %v177_v49 = vadd.f32 %v176_v29, %v85_v34  ;;  %v780_v29 = vor.u32 %v939_v26, %v777_v27 }
  0xaf   :  { %v141_v32 = vadd.f32 %v140_v31, %v90_v23  ;;  %v159_v33 = vpop.f32.mrf.mxu1  ;;  %v196_v52 = vadd.f32 %v195_v30, %v85_v34  ;;  %v940_v30 = vld [vmem:[#allocation2 + $0xc] sm:$0xf]  ;;  %v785_v31 = vld [vmem:[#allocation2 + $0x18] sm:$0xf0] }
  0xb0   :  { %v160_v35 = vadd.f32 %v159_v33, %v90_v23  ;;  %v210_v58 = vmax.f32 %v177_v49, 0.0  ;;  %v954_v33 = vld [vmem:[#allocation5 + $0x38] sm:$0xff] }
  0xb1   :  { %v212_v36 = vmax.f32 %v141_v32, 0.0  ;;  %v211_v60 = vmax.f32 %v196_v52, 0.0  ;;  %v788_v32 = vor.u32 %v940_v30, %v785_v31  ;;  %v962_v34 = vld [vmem:[#allocation5 + $0x78] sm:$0xff] }
  0xb2   :  { %v213_v38 = vmax.f32 %v160_v35, 0.0  ;;  %v970_v35 = vld [vmem:[#allocation5 + $0xb8] sm:$0xff] }
  0xb3   :  { %239 = vmatpush.xpose.msrb.mxu0 %v212_v36  ;;  %v978_v36 = vld [vmem:[#allocation5 + $0xf8] sm:$0xff] }
  0xb4   :  { %259 = vmatpush.xpose.msrb.mxu1 %v213_v38  ;;  %v961_v38 = vld [vmem:[#allocation5 + $0x70] sm:$0xff]  ;;  %v950_v49 = vld [vmem:[#allocation5 + $0x18] sm:$0xff] }
  0xb5   :  { %v178_v41 = vpop.f32.mrf.mxu2  ;;  %v974_v52 = vld [vmem:[#allocation5 + $0xd8] sm:$0xff] }
  0xb6   :  { %v179_v44 = vadd.f32 %v178_v41, %v90_v23  ;;  %v197_v45 = vpop.f32.mrf.mxu3  ;;  %v952_v41 = vld [vmem:[#allocation5 + $0x28] sm:$0xff] }
  0xb7   :  { %v198_v47 = vadd.f32 %v197_v45, %v90_v23  ;;  %240 = vmatpush.xpose.msrb.mxu0 %v208_v42  ;;  %v775_v23 = vld [vmem:[#allocation2] sm:$0xf]  ;;  %v960_v42 = vld [vmem:[#allocation5 + $0x68] sm:$0xff] }
  0xb8   :  { %v214_v50 = vmax.f32 %v179_v44, 0.0  ;;  %260 = vmatpush.xpose.msrb.mxu1 %v209_v46  ;;  %v776_v28 = vor.u32 %v941_v25, %v775_v23  ;;  %v976_v44 = vld [vmem:[#allocation5 + $0xe8] sm:$0xff]  ;;  %v951_v45 = vld [vmem:[#allocation5 + $0x20] sm:$0xff] }
  0xb9   :  { %v215_v53 = vmax.f32 %v198_v47, 0.0  ;;  %v959_v46 = vld [vmem:[#allocation5 + $0x60] sm:$0xff] }
  0xba   :  { %279 = vmatpush.xpose.msrb.mxu2 %v214_v50  ;;  %v967_v47 = vld [vmem:[#allocation5 + $0xa0] sm:$0xff]  ;;  %v958_v50 = vld [vmem:[#allocation5 + $0x58] sm:$0xff] }
  0xbb   :  { %299 = vmatpush.xpose.msrb.mxu3 %v215_v53  ;;  %241 = vmatpush.xpose.msrb.mxu0 %v204_v51  ;;  %v966_v51 = vld [vmem:[#allocation5 + $0x98] sm:$0xff] }
  0xbc   :  { %261 = vmatpush.xpose.msrb.mxu1 %v205_v55  ;;  %v949_v55 = vld [vmem:[#allocation5 + $0x10] sm:$0xff] }
  0xbe   :  { %280 = vmatpush.xpose.msrb.mxu2 %v210_v58 }
  0xbf   :  { %300 = vmatpush.xpose.msrb.mxu3 %v211_v60  ;;  %242 = vmatpush.xpose.msrb.mxu0 %v200_v61  ;;  %v956_v60 = vld [vmem:[#allocation5 + $0x48] sm:$0xff] }
  0xc0   :  { %262 = vmatpush.xpose.msrb.mxu1 %v201_v62 }
  0xc2   :  { %281 = vmatpush.xpose.msrb.mxu2 %v206_v1  ;;  %243 = vmatmul.f32.vlgmr.msrb.gmra.mxu0 %v219_v63 }
  0xc3   :  { %301 = vmatpush.xpose.msrb.mxu3 %v207_v4  ;;  %263 = vmatmul.f32.vlgmr.msrb.gmra.mxu1 %v220_v2  ;;  %v973_v2 = vld [vmem:[#allocation5 + $0xd0] sm:$0xff]  ;;  %v955_v4 = vld [vmem:[#allocation5 + $0x40] sm:$0xff] }
  0xc4   :  { %376 = vmatpush.bf16.msra.mxu0 %v792_v16  ;;  %389 = vmatpush.bf16.msra.mxu1 %v796_v17  ;;  %v320_v17 = vperm.slane %v316_v9, 2 }
  0xc6   :  { %282 = vmatpush.xpose.msrb.mxu2 %v202_v5  ;;  %v964_v5 = vld [vmem:[#allocation5 + $0x88] sm:$0xff] }
  0xc7   :  { %302 = vmatpush.xpose.msrb.mxu3 %v203_v6  ;;  %v972_v6 = vld [vmem:[#allocation5 + $0xc8] sm:$0xff] }
  0xc8   :  { %377 = vmatpush.bf16.msra.mxu0 %v776_v28  ;;  %390 = vmatpush.bf16.msra.mxu1 %v780_v29 }
  0xc9   :  { %283 = vmatmul.f32.vlgmr.msrb.gmra.mxu2 %v221_v7  ;;  %v963_v7 = vld [vmem:[#allocation5 + $0x80] sm:$0xff] }
  0xca   :  { %303 = vmatmul.f32.vlgmr.msrb.gmra.mxu3 %v222_v8  ;;  %402 = vmatpush.bf16.msra.mxu2 %v800_v12  ;;  %v971_v8 = vld [vmem:[#allocation5 + $0xc0] sm:$0xff] }
  0xcb   :  { %415 = vmatpush.bf16.msra.mxu3 %v804_v20 }
  0xcc   :  { %686 = vmatpush.bf16.msrb.mxu0 %v954_v33  ;;  %699 = vmatpush.bf16.msrb.mxu1 %v962_v34 }
  0xce   :  { %403 = vmatpush.bf16.msra.mxu2 %v784_v24 }
  0xcf   :  { %416 = vmatpush.bf16.msra.mxu3 %v788_v32  ;;  %v989_v32 = vld [vmem:[%s1171_s7] ss:$0 sm:$0xff] }
  0xd0   :  { %687 = vmatpush.bf16.msrb.mxu0 %v953_v37  ;;  %700 = vmatpush.bf16.msrb.mxu1 %v961_v38 }
  0xd2   :  { %712 = vmatpush.bf16.msrb.mxu2 %v970_v35 }
  0xd3   :  { %725 = vmatpush.bf16.msrb.mxu3 %v978_v36 }
  0xd4   :  { %688 = vmatpush.bf16.msrb.mxu0 %v952_v41  ;;  %701 = vmatpush.bf16.msrb.mxu1 %v960_v42 }
  0xd6   :  { %713 = vmatpush.bf16.msrb.mxu2 %v969_v39 }
  0xd7   :  { %726 = vmatpush.bf16.msrb.mxu3 %v977_v40 }
  0xd8   :  { %689 = vmatpush.bf16.msrb.mxu0 %v951_v45  ;;  %702 = vmatpush.bf16.msrb.mxu1 %v959_v46 }
  0xda   :  { %714 = vmatpush.bf16.msrb.mxu2 %v968_v43 }
  0xdb   :  { %727 = vmatpush.bf16.msrb.mxu3 %v976_v44 }
  0xdc   :  { %690 = vmatpush.bf16.msrb.mxu0 %v950_v49  ;;  %703 = vmatpush.bf16.msrb.mxu1 %v958_v50 }
  0xde   :  { %715 = vmatpush.bf16.msrb.mxu2 %v967_v47 }
  0xdf   :  { %728 = vmatpush.bf16.msrb.mxu3 %v975_v48 }
  0xe0   :  { %691 = vmatpush.bf16.msrb.mxu0 %v949_v55  ;;  %704 = vmatpush.bf16.msrb.mxu1 %v957_v56 }
  0xe2   :  { %716 = vmatpush.bf16.msrb.mxu2 %v966_v51 }
  0xe3   :  { %729 = vmatpush.bf16.msrb.mxu3 %v974_v52 }
  0xe4   :  { %692 = vmatpush.bf16.msrb.mxu0 %v948_v59  ;;  %705 = vmatpush.bf16.msrb.mxu1 %v956_v60 }
  0xe6   :  { %717 = vmatpush.bf16.msrb.mxu2 %v965_v57 }
  0xe7   :  { %730 = vmatpush.bf16.msrb.mxu3 %v973_v2 }
  0xe8   :  { %693 = vmatpush.bf16.msrb.mxu0 %v947_v3  ;;  %706 = vmatpush.bf16.msrb.mxu1 %v955_v4 }
  0xea   :  { %718 = vmatpush.bf16.msrb.mxu2 %v964_v5 }
  0xeb   :  { %731 = vmatpush.bf16.msrb.mxu3 %v972_v6 }
  0xee   :  { %719 = vmatpush.bf16.msrb.mxu2 %v963_v7 }
  0xef   :  { %732 = vmatpush.bf16.msrb.mxu3 %v971_v8 }
 0x13f   :  { %v244_v53 = vpop.f32.mrf.mxu0 }
 0x140   :  { %v264_v54 = vpop.f32.mrf.mxu1 }
 0x141   :  { %v265_v58 = vadd.f32 %v264_v54, %v244_v53 }
 0x14c   :  { %v284_v61 = vpop.f32.mrf.mxu2 }
 0x14d   :  { %v285_v62 = vadd.f32 %v284_v61, %v265_v58  ;;  %v304_v63 = vpop.f32.mrf.mxu3 }
 0x14f   :  { %v305_v0 = vadd.f32 %v304_v63, %v285_v62 }
 0x151   :  { %v307_v1 = vpack.c.bf16 %v305_v0, %v305_v0 }
 0x153   :  { %807 = vmatmul.msk.bf16.vlgmr.msra.gmra.mxu2 %vm366_vm2, %v307_v1  ;;  %805 = vmatmul.msk.bf16.vlgmr.msra.gmra.mxu0 %vm366_vm2, %v307_v1 }
 0x154   :  { %806 = vmatmul.msk.bf16.vlgmr.msra.gmra.mxu1 %vm366_vm2, %v307_v1  ;;  %808 = vmatmul.msk.bf16.vlgmr.msra.gmra.mxu3 %vm366_vm2, %v307_v1 }
 0x1d0   :  { %v379_v12 = vpop.f32.mrf.mxu0 }
 0x1d1   :  { %v380_v13 = vadd.f32 %v379_v12, %v318_v10  ;;  %v392_v14 = vpop.f32.mrf.mxu1 }
 0x1d2   :  { %v393_v15 = vadd.f32 %v392_v14, %v319_v11 }
 0x1d3   :  { %v422_v16 = vpack.c.bf16 %v380_v13, %v380_v13 }
 0x1d4   :  { %v423_v18 = vpack.c.bf16 %v393_v15, %v393_v15 }
 0x1d5   :  { %694 = vmatmul.bf16.vlgmr.msrb.gmra.mxu0 %v422_v16 }
 0x1d6   :  { %v405_v20 = vpop.f32.mrf.mxu2  ;;  %707 = vmatmul.bf16.vlgmr.msrb.gmra.mxu1 %v423_v18 }
 0x1d7   :  { %v406_v21 = vadd.f32 %v405_v20, %v320_v17  ;;  %v418_v22 = vpop.f32.mrf.mxu3 }
 0x1d8   :  { %v419_v23 = vadd.f32 %v418_v22, %v321_v19  ;;  %v381_v24 = vpop.f32.mrf.mxu0 }
 0x1d9   :  { %v424_v25 = vpack.c.bf16 %v406_v21, %v406_v21  ;;  %v394_v26 = vpop.f32.mrf.mxu1 }
 0x1da   :  { %v425_v27 = vpack.c.bf16 %v419_v23, %v419_v23 }
 0x1db   :  { %720 = vmatmul.bf16.vlgmr.msrb.gmra.mxu2 %v424_v25 }
 0x1dc   :  { %733 = vmatmul.bf16.vlgmr.msrb.gmra.mxu3 %v425_v27 }
 0x1de   :  { %v407_v28 = vpop.f32.mrf.mxu2 }
 0x1df   :  { %v420_v29 = vpop.f32.mrf.mxu3 }
 0x252   :  { %v695_v30 = vpop.f32.mrf.mxu0 }
 0x253   :  { %v708_v31 = vpop.f32.mrf.mxu1  ;;  %v696_v33 = vadd.f32 %v989_v32, %v695_v30 }
 0x255   :  { %v709_v36 = vadd.f32 %v708_v31, %v696_v33 }
 0x25a   :  { %v697_v34 = vpop.f32.mrf.mxu0 }
 0x25b   :  { %v710_v35 = vpop.f32.mrf.mxu1 }
 0x25e   :  { %v721_v37 = vpop.f32.mrf.mxu2 }
 0x25f   :  { %v722_v38 = vadd.f32 %v721_v37, %v709_v36  ;;  %v734_v39 = vpop.f32.mrf.mxu3 }
 0x261   :  { %v735_v40 = vadd.f32 %v734_v39, %v722_v38 }
 0x263   :  { %738 = vst [vmem:[#allocation7] sm:$0x3] %v735_v40 }
 0x264   :  { %749 = dma.vmem_to_hbm [thread:$0]  %s745_s11, 32, %s747_s14, [#allocation4]  }
 0x266   :  { %v723_v41 = vpop.f32.mrf.mxu2 }
 0x267   :  { %v736_v42 = vpop.f32.mrf.mxu3 }
 0x268   :  { %1066 = dma.done.wait [#allocation4], 32  }
 0x269   :  { %1067 = vsyncadd [#allocation4], 4294967264 }
 0x26a   :  { %754 = vsyncpa [#allocation3], 1 }
 0x26b   :  { %755 = vsyncpa [#allocation6], 1 }
 0x26c   :  { %756 = vsyncpa [#allocation4], 1 }

</bundles_post_ra>
